<compile_context>
chip_gen: v7x
topology: tpu7x:2x2x1
jax: 0.10.0
libtpu: 0.0.40
codegen_flags: <defaults>
</compile_context>

<pallas_src>
import jax
import jax.numpy as jnp
from jax.experimental import pallas as pl
from jax.experimental.pallas import tpu as pltpu


# ---------------------------------------------------------------------------
# Kernel: one lane-dense tile of the combine,   out = A' @ coords^T + const
# ---------------------------------------------------------------------------
def combine_kernel(a_ref, const_ref, coords_ref, out_ref):
    # a_ref      : [3B, C]       (resident across the grid)
    # const_ref  : [3B, 1]       (resident across the grid)
    # coords_ref : [C, TILE_N]   (lane-dense coordinate tile)
    # out_ref    : [3B, TILE_N]
    out_ref[...] = (
        jnp.dot(a_ref[...], coords_ref[...], preferred_element_type=jnp.float32)
        + const_ref[...]
    )


# ---------------------------------------------------------------------------
# Wrapper
# ---------------------------------------------------------------------------
def _round_up(x, m):
    return ((x + m - 1) // m) * m


def _vmem_limit_bytes():
    # Generation-aware scoped-VMEM limit: v5e/v6e have 128 MiB physical VMEM,
    # v7x only 64 MiB.  3/4 of physical, capped at 64 MiB, leaves headroom.
    cap = 128 * 1024 * 1024
    try:
        info = pltpu.get_tpu_info()
        cap = int(getattr(info, "vmem_capacity_bytes", cap))
    except Exception:
        pass
    return min((cap * 3) // 4, 64 * 1024 * 1024)


def _choose_tile_n(B, C, N, vmem_limit):
    # Padded f32 footprints (double-buffered BlockSpec pipelining):
    #   coords block   : round_up(C, 8)  sublanes x tile_n lanes
    #   output block   : round_up(3B, 8) sublanes x tile_n lanes
    #   resident A'    : round_up(3B, 8) x round_up(C, 128)
    #   resident const : round_up(3B, 8) x 128
    sub_out = _round_up(3 * B, 8)
    sub_crd = _round_up(C, 8)
    fixed = 2 * sub_out * (_round_up(C, 128) + 128) * 4
    per_n = 2 * (sub_out + sub_crd) * 4
    budget = max(vmem_limit - 4 * 1024 * 1024 - fixed, per_n * 128)
    tile = max(128, (budget // per_n) // 128 * 128)
    n128 = _round_up(N, 128)
    tile = min(tile, n128)
    # Keep >= 2 grid steps when possible so the "parallel" N axis can be
    # sharded across both TensorCores on v7x (no-op cost on v5e/v6e).
    if n128 >= 256:
        tile = min(tile, _round_up(pl.cdiv(N, 2), 128))
    return int(tile)


def pod_deeponet_forward(noise, coords, params, tile_n=None):
    """Returns (g_e, g_x, g_y), each shape [B*N], float32."""
    (w1, b1, w2, b2, w3, b3, w4, b4, w5, b5, wt, bt, wm, bm) = params
    B = noise.shape[0]
    N, C = coords.shape
    p3 = w5.shape[1]
    p = p3 // 3

    # --- Branch MLP + algebraic hoist of the p-contraction (plain XLA; tiny) -
    h = jnp.tanh(noise @ w1 + b1)
    h = jnp.tanh(h @ w2 + b2)
    h = jnp.tanh(h @ w3 + b3)
    h = jnp.tanh(h @ w4 + b4)
    out_b = h @ w5 + b5                                   # [B, 3p]

    out_b3 = out_b.reshape(B, 3, p)                       # component-major view
    wt3 = wt.reshape(C, 3, p)
    bt3 = bt.reshape(3, p)
    # A'[c, b, k] = sum_p out_b[b, c, p] * wt[k, c, p]  (+ trunk_means weights)
    a = jnp.einsum("bcp,kcp->cbk", out_b3, wt3) + wm.T[:, None, :]
    a = a.reshape(3 * B, C).astype(jnp.float32)           # [3B, C]
    const = jnp.einsum("bcp,cp->cb", out_b3, bt3) + bm.reshape(3, 1)
    const = const.reshape(3 * B, 1).astype(jnp.float32)   # [3B, 1]

    # --- Pallas: tiled [3B, C] @ [C, N], lane-dense tiles along N -------------
    vmem_limit = _vmem_limit_bytes()
    if tile_n is None:
        tile_n = _choose_tile_n(B, C, N, vmem_limit)
    n_pad = _round_up(N, tile_n)
    coords_t = jnp.pad(coords.T.astype(jnp.float32), ((0, 0), (0, n_pad - N)))
    grid = (n_pad // tile_n,)

    flops = int(2 * 3 * B * C * n_pad + 3 * B * n_pad)
    bytes_accessed = int(4 * (3 * B * N + C * n_pad + 3 * B * C + 3 * B))

    out = pl.pallas_call(
        combine_kernel,
        # True N in the out_shape: Pallas drops out-of-bounds writes of the
        # ragged last block, so no post-kernel slice/copy is needed.
        out_shape=jax.ShapeDtypeStruct((3 * B, N), jnp.float32),
        grid=grid,
        in_specs=[
            pl.BlockSpec((3 * B, C), lambda i: (0, 0)),      # A'    (resident)
            pl.BlockSpec((3 * B, 1), lambda i: (0, 0)),      # const (resident)
            pl.BlockSpec((C, tile_n), lambda i: (0, i)),     # coords^T tile
        ],
        out_specs=pl.BlockSpec((3 * B, tile_n), lambda i: (0, i)),
        compiler_params=pltpu.CompilerParams(
            dimension_semantics=("parallel",),
            vmem_limit_bytes=vmem_limit),
        cost_estimate=pl.CostEstimate(
            flops=flops, transcendentals=0, bytes_accessed=bytes_accessed),
    )(a, const, coords_t)

    # [3B, N] row-major == [3, B, N]; per-component flatten (contiguous views),
    # row index b*N + n matches repeat_interleave(branch) x tile(trunk).
    out_flat = out.reshape(3, B * N)
    return out_flat[0], out_flat[1], out_flat[2]


# ---------------------------------------------------------------------------
# Parameter construction + pure-JAX reference (matches the torch module)
# ---------------------------------------------------------------------------
def init_linear(key, in_dim, out_dim):
    # PyTorch nn.Linear default: U(-1/sqrt(fan_in), 1/sqrt(fan_in))
    kw, kb = jax.random.split(key)
    bound = 1.0 / jnp.sqrt(jnp.float32(in_dim))
    w = jax.random.uniform(kw, (in_dim, out_dim), jnp.float32, -bound, bound)
    b = jax.random.uniform(kb, (1, out_dim), jnp.float32, -bound, bound)
    return w, b


def make_params(key, noise_feature, coord_dim, p, width=32):
    p3 = 3 * p
    keys = jax.random.split(key, 7)
    w1, b1 = init_linear(keys[0], noise_feature, width)
    w2, b2 = init_linear(keys[1], width, width)
    w3, b3 = init_linear(keys[2], width, width)
    w4, b4 = init_linear(keys[3], width, width)
    w5, b5 = init_linear(keys[4], width, p3)
    wt, bt = init_linear(keys[5], coord_dim, p3)   # trunk_components proxy
    wm, bm = init_linear(keys[6], coord_dim, 3)    # trunk_means proxy
    return (w1, b1, w2, b2, w3, b3, w4, b4, w5, b5, wt, bt, wm, bm)


def reference_forward(noise, coords, params):
    (w1, b1, w2, b2, w3, b3, w4, b4, w5, b5, wt, bt, wm, bm) = params
    h = jnp.tanh(noise @ w1 + b1)
    h = jnp.tanh(h @ w2 + b2)
    h = jnp.tanh(h @ w3 + b3)
    h = jnp.tanh(h @ w4 + b4)
    out_b = h @ w5 + b5
    out_t = coords @ wt + bt
    out_bias = coords @ wm + bm

    B, N = noise.shape[0], coords.shape[0]
    p3 = out_b.shape[1]
    p = p3 // 3
    ob = jnp.repeat(out_b, N, axis=0)          # repeat_interleave(N, dim=0)
    ot = jnp.tile(out_t, (B, 1))               # torch.tile(out_t, [B, 1])
    obias = jnp.tile(out_bias, (B, 1))         # squeeze is a no-op ([B*N, 3])
    ge = jnp.sum(ob[:, :p] * ot[:, :p], axis=1) + obias[:, 0]
    gx = jnp.sum(ob[:, p:2 * p] * ot[:, p:2 * p], axis=1) + obias[:, 1]
    gy = jnp.sum(ob[:, 2 * p:] * ot[:, 2 * p:], axis=1) + obias[:, 2]
    return ge, gx, gy


if __name__ == "__main__":
    key = jax.random.PRNGKey(0)
    k_noise, k_coords, k_params = jax.random.split(key, 3)

    B = 2               # batch of noise samples
    noise_feature = 8   # sensor count
    coord_dim = 2       # coordinate dimension
    p = 4               # PCA modes per component -> branch out = 3p = 12
    N = 300             # query coordinates (non-multiple of 128 -> ragged tile)

    noise = jax.random.normal(k_noise, (B, noise_feature), jnp.float32)
    coords = jax.random.normal(k_coords, (N, coord_dim), jnp.float32)
    params = make_params(k_params, noise_feature, coord_dim, p)

    ge_r, gx_r, gy_r = reference_forward(noise, coords, params)

    # Explicit small tile: exercises the multi-step grid + ragged last block.
    ge, gx, gy = pod_deeponet_forward(noise, coords, params, tile_n=128)
    jax.block_until_ready((ge, gx, gy))
    assert ge.shape == (B * N,) and gx.shape == (B * N,) and gy.shape == (B * N,)
    assert jnp.allclose(ge, ge_r, atol=1e-4, rtol=1e-4)
    assert jnp.allclose(gx, gx_r, atol=1e-4, rtol=1e-4)
    assert jnp.allclose(gy, gy_r, atol=1e-4, rtol=1e-4)

    # Auto tile selection (VMEM-budgeted, >=2 grid steps at this N).
    ge2, gx2, gy2 = pod_deeponet_forward(noise, coords, params)
    jax.block_until_ready((ge2, gx2, gy2))
    assert jnp.allclose(ge2, ge_r, atol=1e-4, rtol=1e-4)
    assert jnp.allclose(gx2, gx_r, atol=1e-4, rtol=1e-4)
    assert jnp.allclose(gy2, gy_r, atol=1e-4, rtol=1e-4)

    print("KERNEL_OK")
</pallas_src>

<mosaic_0001>
module attributes {stable_mosaic.version = 11 : i64} {
  func.func @combine_kernel(%arg0: i32, %arg1: memref<6x2xf32, #tpu.memory_space<vmem>>, %arg2: memref<6x1xf32, #tpu.memory_space<vmem>>, %arg3: memref<2x128xf32, #tpu.memory_space<vmem>>, %arg4: memref<6x128xf32, #tpu.memory_space<vmem>>) attributes {dimension_semantics = [#tpu.dimension_semantics<parallel>], iteration_bounds = array<i64: 3>, scalar_prefetch = 0 : i64, scratch_operands = 0 : i64, tpu.core_type = #tpu.core_type<tc>, window_params = [{pipeline_mode = #tpu.pipeline_mode<synchronous>, transform_indices = @transform_0, window_bounds = array<i64: 6, 2>}, {pipeline_mode = #tpu.pipeline_mode<synchronous>, transform_indices = @transform_1, window_bounds = array<i64: 6, 1>}, {transform_indices = @transform_2, window_bounds = array<i64: 2, 128>}, {transform_indices = @transform_3, window_bounds = array<i64: 6, 128>}]} {
    %c0 = arith.constant 0 : index
    %c0_0 = arith.constant 0 : index
    %0 = vector.load %arg1[%c0, %c0_0] : memref<6x2xf32, #tpu.memory_space<vmem>>, vector<6x2xf32>
    %c0_1 = arith.constant 0 : index
    %c0_2 = arith.constant 0 : index
    %1 = vector.load %arg3[%c0_1, %c0_2] : memref<2x128xf32, #tpu.memory_space<vmem>>, vector<2x128xf32>
    %cst = arith.constant dense<0.000000e+00> : vector<6x128xf32>
    %2 = tpu.matmul %0, %1, %cst {dimension_numbers = #tpu.dot_dimension_numbers<[1], [0], [0], [1], [0, 0, 1, 1], [], []>} : vector<6x2xf32>, vector<2x128xf32>, vector<6x128xf32> -> vector<6x128xf32>
    %c0_3 = arith.constant 0 : index
    %c0_4 = arith.constant 0 : index
    %3 = vector.load %arg2[%c0_3, %c0_4] : memref<6x1xf32, #tpu.memory_space<vmem>>, vector<6x1xf32>
    %4 = vector.broadcast %3 : vector<6x1xf32> to vector<6x128xf32>
    %5 = arith.addf %2, %4 : vector<6x128xf32>
    %c0_5 = arith.constant 0 : index
    %c0_6 = arith.constant 0 : index
    %6 = vector.load %arg4[%c0_5, %c0_6] : memref<6x128xf32, #tpu.memory_space<vmem>>, vector<6x128xf32>
    tpu.vector_store %arg4[%c0_5, %c0_6], %5 {strides = array<i32>} : memref<6x128xf32, #tpu.memory_space<vmem>>, vector<6x128xf32>,
    return
  }
  func.func @transform_0(%arg0: i32) -> (i32, i32) {
    %c0_i32 = arith.constant 0 : i32
    %c0_i32_0 = arith.constant 0 : i32
    %c0_i32_1 = arith.constant 0 : i32
    return %c0_i32, %c0_i32_0 : i32, i32
  }
  func.func @transform_1(%arg0: i32) -> (i32, i32) {
    %c0_i32 = arith.constant 0 : i32
    %c0_i32_0 = arith.constant 0 : i32
    %c0_i32_1 = arith.constant 0 : i32
    return %c0_i32, %c0_i32_0 : i32, i32
  }
  func.func @transform_2(%arg0: i32) -> (i32, i32) {
    %c0_i32 = arith.constant 0 : i32
    %c0_i32_0 = arith.constant 0 : i32
    return %c0_i32, %arg0 : i32, i32
  }
  func.func @transform_3(%arg0: i32) -> (i32, i32) {
    %c0_i32 = arith.constant 0 : i32
    %c0_i32_0 = arith.constant 0 : i32
    return %c0_i32, %arg0 : i32, i32
  }
}

</mosaic_0001>

<bundles_post_ra>
// kernel: tpu_custom_call.1
= control target key start
LH: loop header
LB: loop body
LE: loop exit
PB: predicated region body
PF: predicated region fallthrough
CT: control target
= control target key end

     0   :  { %8 = vsyncpa [#allocation3], 0  ;;  %s913_s0 = inlined_call_operand.hbm [shape: f32[6,2], index: 0, kind: input, shape index: {}]   ;;  %s914_s1 = inlined_call_operand.hbm [shape: f32[6,1], index: 1, kind: input, shape index: {}]   ;;  %s915_s2 = inlined_call_operand.hbm [shape: f32[2,384], index: 2, kind: input, shape index: {}]   ;;  %s916_s3 = inlined_call_operand.hbm [shape: f32[6,300], index: 3, kind: output, shape index: {}]  }
   0x1   :  { %9 = vsyncpa [#allocation6], 0 }
   0x2   :  { %10 = vsyncpa [#allocation4], 0 }
   0x3   :  { %12 = vsyncpa [#allocation4 + $0x1], 0  ;;  %s684_s12 = smov 0   ;;  %s686_s13 = smov 0  }
   0x4   :  { %s688_s14 = smov 0   ;;  %s690_s15 = smov 0  }
   0x5 LB: > { %s705_s16 = sadd.s32 4294967295, %s655_s15   ;;  %s399_s17 = sadd.s32 4294967294, %s655_s15   ;;  %s655_s15 = sphi %s690_s15, %s937_s15   ;;  %s651_s14 = sphi %s688_s14, %s936_s14   ;;  %s647_s13 = sphi %s686_s13, %s935_s13   ;;  %s643_s12 = sphi %s684_s12, %s934_s12  }
   0x6   : > { %p80_p0 = scmp.ne.s32.totalorder %s647_s13, %s643_s12  ;;  %p917_p1 = scmp.eq.s32.totalorder %s705_s16, 0 }
   0x7   : > { %p110_p3 = scmp.eq.s32.totalorder %s399_s17, 2  ;;  %p400_p5 = scmp.ge.s32.totalorder %s655_s15, 1 }
   0x8   : > { %p714_p4 = por %p917_p1, %p80_p0  ;;  %p117_p7 = scmp.lt.s32.totalorder %s655_s15, 4 }
   0x9   : > { %p719_p6 = por %p110_p3, %p80_p0  ;;  %s657_s21 = smov [#allocation2]  }
   0xa   : > { %s920_s18 = scalar_select %p714_p4, 1, 0 }
   0xb   : > { %s921_s19 = scalar_select %p719_p6, 1, 0 }
   0xc   : > { %p724_p8 = pnand %p400_p5, %p117_p7  ;;  %s130_s22 = sshll.u32 %s657_s21, 4  ;;  %s131_s22 = int_to_ptr.vmem [resolvable:$true] %s130_s22 }
   0xd   : > { %s658_s23 = smov [#allocation5]   ;;  %s739_s26 = sadd.s32 1, %s655_s15  }
   0xe   : > { %s922_s20 = scalar_select %p724_p8, 1, 0 }
   0xf   : > { %p436_p9 = pneg %p724_p8  ;;  %s141_s24 = sshll.u32 %s658_s23, 4  ;;  %s736_s24 = int_to_ptr.vmem [resolvable:$true] %s141_s24 }
  0x10   : > { %s64_s27 = ssub.s32 %s655_s15, %s739_s26  ;;  %s495_s30 = scalar_lea.hbm %s913_s0, 128 }
  0x11   : > { %p732_p10 = pnand %p436_p9, %p917_p1  ;;  %p496_p11 = scmp.ne.s32.totalorder %s913_s0, %s495_s30 }
  0x12   : > { %p502_p3 = scmp.lt.u32.totalorder %s495_s30, %s913_s0 }
  0x13   : > { %p497_p12 = pneg %p732_p10 }
  0x15   : > { %p498_p13 = pnand %p497_p12, %p496_p11 }
  0x17   : > { %p499_p0 = pneg %p498_p13 }
  0x19   : > { %p504_p5 = pnand %p502_p3, %p499_p0 }
  0x1b   : > { %507 = shalt.err (!%p504_p5)
}
  0x1c   : > { %s508_s8 = scalar_lea.vmem %s131_s22, 128  ;;  %p516_p2 = scmp.lt.s32.totalorder %s131_s22, %s131_s22 }
  0x1d   : > { %p509_p7 = scmp.ne.s32.totalorder %s131_s22, %s508_s8  ;;  %p517_p6 = scmp.lt.s32.totalorder %s508_s8, %s508_s8 }
  0x1f   : > { %p511_p9 = pnand %p509_p7, %p497_p12  ;;  %p518_p4 = por %p517_p6, %p516_p2 }
  0x21   : > { %p512_p1 = pneg %p511_p9 }
  0x23   : > { %p519_p8 = pnand %p518_p4, %p512_p1 }
  0x25   : > { %522 = shalt.err (!%p519_p8)
}
  0x26   : > { %439 = dma.hbm_to_vmem [thread:$0]  (!%p732_p10), %s913_s0, 128, %s131_s22, [#allocation3]  }
  0x27   : > { %s523_s21 = scalar_lea.hbm %s914_s1, 128 }
  0x28   : > { %p524_p11 = scmp.ne.s32.totalorder %s914_s1, %s523_s21  ;;  %p530_p4 = scmp.lt.u32.totalorder %s523_s21, %s914_s1 }
  0x2a   : > { %p526_p2 = pnand %p524_p11, %p497_p12 }
  0x2c   : > { %p527_p1 = pneg %p526_p2 }
  0x2e   : > { %p532_p6 = pnand %p530_p4, %p527_p1 }
  0x30   : > { %535 = shalt.err (!%p532_p6)
}
  0x31   : > { %s536_s22 = scalar_lea.vmem %s736_s24, 128  ;;  %p544_p3 = scmp.lt.s32.totalorder %s736_s24, %s736_s24 }
  0x32   : > { %p537_p8 = scmp.ne.s32.totalorder %s736_s24, %s536_s22  ;;  %p545_p5 = scmp.lt.s32.totalorder %s536_s22, %s536_s22 }
  0x34   : > { %p539_p13 = pnand %p537_p8, %p497_p12  ;;  %p546_p7 = por %p545_p5, %p544_p3 }
  0x36   : > { %p540_p0 = pneg %p539_p13 }
  0x38   : > { %p547_p9 = pnand %p546_p7, %p540_p0 }
  0x3a   : > { %550 = shalt.err (!%p547_p9)
}
  0x3b   : > { %442 = dma.hbm_to_vmem [thread:$0]  (!%p732_p10), %s914_s1, 128, %s736_s24, [#allocation6]  }
  0x3c   : > { %p65_p12 = scmp.eq.s32.totalorder %s64_s27, 0  ;;  %s67_s25 = sadd.s32 1, %s651_s14 }
  0x3d   : > { %p74_p11 = scmp.ne.s32.totalorder %s651_s14, %s647_s13  ;;  %p75_p2 = scmp.eq.s32.totalorder %s655_s15, 0 }
  0x3e   : > { %s798_s6 = scalar_select %p65_p12, %s651_s14, %s67_s25  }
  0x3f   : > { %p76_p1 = por %p75_p2, %p74_p11  ;;  %p924_p4 = scmp.eq.s32.totalorder %s705_s16, 2 }
  0x40   : > { %p453_p8 = scmp.lt.s32.totalorder %s655_s15, 3  ;;  %s152_s8 = sand.u32 1, %s655_s15  }
  0x41   : > { %p802_p6 = por %p924_p4, %p74_p11  ;;  %s154_s9 = sand.u32 1, %s651_s14  }
  0x42   : > { %s404_s10 = sshll.u32 %s154_s9, 1  ;;  %s405_s11 = sshll.u32 %s655_s15, 5 }
  0x43   : > { %s813_s27 = scalar_lea.hbm %s915_s2, %s405_s11  ;;  %s156_s21 = scalar_lea.vmem [#allocation7], %s404_s10 }
  0x44   : > { %s163_s23 = sshll.u32 %s156_s21, 4  ;;  %p815_p10 = pnand %p453_p8, %p76_p1  ;;  %s819_s23 = int_to_ptr.vmem [resolvable:$true] %s163_s23 }
  0x45   : > { %s153_s29 = scalar_lea.sflag [#allocation3], %s152_s8  ;;  %s551_s30 = scalar_lea.hbm %s813_s27, 32 }
  0x46   : > { %p552_p13 = scmp.ne.s32.totalorder %s813_s27, %s551_s30  ;;  %p553_p0 = pneg %p815_p10 }
  0x47   : > { %s556_s5 = scalar_lea.hbm %s915_s2, 96  ;;  %p557_p7 = scmp.lt.u32.totalorder %s813_s27, %s915_s2 }
  0x48   : > { %p554_p3 = pnand %p553_p0, %p552_p13  ;;  %p558_p9 = scmp.lt.u32.totalorder %s556_s5, %s551_s30 }
  0x49   : > { %p560_p11 = scmp.lt.u32.totalorder %s551_s30, %s813_s27 }
  0x4a   : > { %p555_p5 = pneg %p554_p3  ;;  %p559_p12 = por %p558_p9, %p557_p7 }
  0x4c   : > { %p561_p2 = por %p560_p11, %p559_p12 }
  0x4e   : > { %p562_p1 = pnand %p561_p2, %p555_p5 }
  0x50   : > { %565 = shalt.err (!%p562_p1)
}
  0x51   : > { %s566_s8 = scalar_lea.vmem %s819_s23, 32  ;;  %s659_s10 = smov [#allocation7]  }
  0x52   : > { %p567_p4 = scmp.ne.s32.totalorder %s819_s23, %s566_s8  ;;  %s571_s11 = sshll.u32 %s659_s10, 4  ;;  %s572_s11 = int_to_ptr.vmem [resolvable:$false] %s571_s11 }
  0x53   : > { %s573_s17 = scalar_lea.vmem %s572_s11, 64  ;;  %p574_p3 = scmp.lt.s32.totalorder %s819_s23, %s572_s11 }
  0x54   : > { %p569_p8 = pnand %p567_p4, %p553_p0  ;;  %p575_p7 = scmp.lt.s32.totalorder %s573_s17, %s566_s8 }
  0x56   : > { %p570_p13 = pneg %p569_p8  ;;  %p576_p9 = por %p575_p7, %p574_p3 }
  0x58   : > { %p577_p12 = pnand %p576_p9, %p570_p13 }
  0x5a   : > { %580 = shalt.err (!%p577_p12)
}
  0x5b   : > { %446 = dma.hbm_to_vmem [thread:$0]  (!%p815_p10), %s813_s27, 32, %s819_s23, %s153_s29  }
  0x5c   : > { %p927_p5 = scmp.ne.s32.totalorder %s922_s20, 0 }
  0x5d   : > { %p928_p0 = scmp.eq.s32.totalorder (!%p927_p5), %s705_s16, 0 }
  0x5e   : > { %172 = sbr.rel (%p927_p5) target bundleno = 341 (0x155), region = 32 }
  0x65   : > { %626 = dma.done.wait (%p928_p0), [#allocation3], 128   ;;  %p929_p11 = pmov %p928_p0 }
  0x66   : > { %p930_p2 = pmov %p928_p0 }
  0x67   : > { %628 = vsyncadd (%p929_p11), [#allocation3], 4294967168 }
  0x68   : > { %630 = dma.done.wait (%p930_p2), [#allocation6], 128   ;;  %p931_p1 = pmov %p928_p0 }
  0x69   : > { %s182_s24 = sand.u32 1, %s705_s16   ;;  %s858_s27 = sand.u32 1, %s647_s13  }
  0x6a   : > { %632 = vsyncadd (%p931_p1), [#allocation6], 4294967168  ;;  %s409_s20 = sshll.u32 %s858_s27, 1  ;;  %s183_s21 = scalar_lea.sflag [#allocation3], %s182_s24 }
  0x6b   : > { %s186_s23 = scalar_lea.vmem [#allocation7], %s409_s20  ;;  %p932_p10 = scmp.ne.s32.totalorder %s920_s18, 0 }
  0x6d   : > { %634 = dma.done.wait (%p932_p10), %s183_s21, 32  }
  0x6e   : > { %636 = vsyncadd (%p932_p10), %s183_s21, 4294967264  ;;  %v660_v0 = vmov 0.0   ;;  %vm661_vm0 = vmmov 0   ;;  %v662_v1 = vmov 0   ;;  %vm221_vm1 = vcmask 1041408   ;;  %s410_s18 = sshll.u32 %s858_s27, 3 }
  0x6f   : > { %419 = vmatprep.subr.mxu0 %v660_v0  ;;  %421 = vmatprep.mubr.msk.f32.mxu0 %vm661_vm0, %v660_v0  ;;  %vm217_vm2 = vcmask 15360   ;;  %v210_v2 = vld [vmem:[%s186_s23] sm:$0x3]  ;;  %v209_v3 = vld [vmem:[#allocation2] sm:$0x3f]  ;;  %s414_s28 = sshll.u32 %s705_s16, 7 }
  0x70   : > { %494 = vset.pattern.permute.xlu0 %v662_v1  ;;  %v211_v4 = vld [vmem:[#allocation5] sm:$0x3f]  ;;  %420 = vmatpush3.msk.msra.mxu0 %vm221_vm1, %v210_v2  ;;  %s208_s29 = scalar_lea.vmem [#allocation8], %s410_s18  ;;  %s870_s5 = scalar_lea.hbm %s916_s3, %s414_s28 }
  0x71   : > { %214 = vperm.xlu0 %494, %v211_v4   ;;  %422 = vmatmul.mubr.msk.f32.vlgmr.msra.gmra.mrb[0].mxu0 %vm217_vm2, %v209_v3  ;;  %s310_s30 = sshll.u32 %s208_s29, 4  ;;  %s297_s25 = scalar_lea.sflag [#allocation4], %s858_s27  ;;  %s872_s30 = int_to_ptr.vmem [resolvable:$true] %s310_s30 }
  0x72   : > { %s581_s9 = scalar_lea.vmem %s872_s30, 128  ;;  %s663_s16 = smov [#allocation8]  }
  0x73   : > { %p582_p4 = scmp.ne.s32.totalorder %s872_s30, %s581_s9  ;;  %s585_s8 = sshll.u32 %s663_s16, 4  ;;  %s586_s8 = int_to_ptr.vmem [resolvable:$false] %s585_s8 }
  0x74   : > { %s587_s10 = scalar_lea.vmem %s586_s8, 256  ;;  %p588_p3 = scmp.lt.s32.totalorder %s872_s30, %s586_s8 }
  0x75   : > { %p583_p8 = pnand %p582_p4, %p802_p6  ;;  %p589_p7 = scmp.lt.s32.totalorder %s587_s10, %s581_s9 }
  0x77   : > { %p584_p13 = pneg %p583_p8  ;;  %p590_p9 = por %p589_p7, %p588_p3 }
  0x79   : > { %p591_p12 = pnand %p590_p9, %p584_p13 }
  0xf0   : > { %v215_v5 = vpop.permute.xlu0 %214 }
 0x144   : > { %v291_v6 = vpop.f32.mrb[0].mxu0 }
 0x145   : > { %v292_v7 = vadd.f32 %v291_v6, %v215_v5  ;;  %v423_v8 = vpop.f32.mrb[1].mxu0 }
 0x147   : > { %295 = vst [vmem:[%s208_s29] sm:$0x3f] %v292_v7 }
 0x148   : > { %594 = shalt.err (!%p591_p12)
}
 0x149   : > { %s595_s11 = scalar_lea.hbm %s870_s5, 128  ;;  %s599_s27 = scalar_lea.hbm %s916_s3, 384 }
 0x14a   : > { %p596_p5 = scmp.ne.s32.totalorder %s870_s5, %s595_s11  ;;  %p600_p2 = scmp.lt.u32.totalorder %s870_s5, %s916_s3 }
 0x14b   : > { %p601_p1 = scmp.lt.u32.totalorder %s599_s27, %s595_s11  ;;  %p603_p4 = scmp.lt.u32.totalorder %s595_s11, %s870_s5 }
 0x14c   : > { %p597_p0 = pnand %p596_p5, %p802_p6 }
 0x14d   : > { %p602_p10 = por %p601_p1, %p600_p2 }
 0x14e   : > { %p598_p11 = pneg %p597_p0 }
 0x14f   : > { %p604_p8 = por %p603_p4, %p602_p10 }
 0x151   : > { %p605_p13 = pnand %p604_p8, %p598_p11 }
 0x153   : > { %608 = shalt.err (!%p605_p13)
}
 0x154   : > { %434 = dma.vmem_to_hbm [thread:$0]  (%p802_p6), %s872_s30, 128, %s870_s5, %s297_s25  }
 0x155 PF: > { %p456_p3 = scmp.ge.s32.totalorder %s655_s15, 2  ;;  %s322_s23 = sand.u32 1, %s643_s12  }
 0x156   : > { %p933_p7 = scmp.ne.s32.totalorder %s921_s19, 0  ;;  %s323_s18 = scalar_lea.sflag [#allocation4], %s322_s23 }
 0x158   : > { %p448_p9 = pnand %p456_p3, %p933_p7 }
 0x15a   : > { %638 = dma.done.wait (!%p448_p9), %s323_s18, 128  }
 0x15b   : > { %640 = vsyncadd (!%p448_p9), %s323_s18, 4294967168  ;;  %p15_p12 = scmp.ge.s32.totalorder %s739_s26, 5   ;;  %s934_s12 = smov %s647_s13 }
 0x15c   : > { %s935_s13 = smov %s651_s14  ;;  %s936_s14 = smov %s798_s6 }
 0x15d   : > { %s937_s15 = smov %s739_s26  ;;  %17 = sbr.rel (!%p15_p12) target bundleno = 5 (0x5), region = 84 }
 0x164   :  { %328 = vsyncpa [#allocation3], 1 }
 0x165   :  { %330 = vsyncpa [#allocation3 + $0x1], 1 }
 0x166   :  { %331 = vsyncpa [#allocation6], 1 }
 0x167   :  { %332 = vsyncpa [#allocation4], 1 }
 0x168   :  { %334 = vsyncpa [#allocation4 + $0x1], 1 }

</bundles_post_ra>
